<compile_context>
chip_gen: v6e
topology: v6e:2x2x1
jax: 0.10.0
libtpu: 0.0.40
codegen_flags: <defaults>
</compile_context>

<pallas_src>
import functools

import jax
import jax.numpy as jnp
from jax.experimental import pallas as pl
from jax.experimental.pallas import tpu as pltpu

_EPS = 1e-12  # torch.nn.functional.normalize default eps (clamps the norm)


def _l2_normalize_f32(x):
    """F.normalize(x, dim=-1) computed in f32 (EUP rsqrt + VPU multiply)."""
    xf = x.astype(jnp.float32)
    sq = jnp.sum(xf * xf, axis=-1, keepdims=True)
    scale = jax.lax.rsqrt(jnp.maximum(sq, jnp.float32(_EPS * _EPS)))
    return xf * scale


def _fold_rows(x):
    """Reduce (R, C) -> (8, C) by summing sublane groups.

    The reshape only splits the sublane-major axis, so it is layout-preserving
    (no cross-lane / cross-sublane movement); the sum over axis 0 is pure VPU adds.
    """
    r, c = x.shape
    if r % 8 == 0:
        return x.reshape(r // 8, 8, c).sum(axis=0)
    # Tiny / irregular tile fallback: one cross-sublane reduce placed in row 0.
    s = jnp.sum(x, axis=0, keepdims=True)                       # (1, C)
    row = jax.lax.broadcasted_iota(jnp.int32, (8, c), 0)
    return jnp.where(row == 0, jnp.broadcast_to(s, (8, c)), jnp.float32(0.0))


def _info_nce_partial_kernel(q_ref, kt_ref, pos_ref, exp_ref, *,
                             inv_temp, num_pos, tile_k):
    """Per (query-tile, key-tile) step: accumulate sum(pos_logits), sum(exp(logits/t))."""
    j = pl.program_id(1)  # key-tile (reduction) axis

    @pl.when(j == 0)
    def _init():
        pos_ref[...] = jnp.zeros_like(pos_ref)
        exp_ref[...] = jnp.zeros_like(exp_ref)

    # (tile_q, D) bf16 x (D, tile_k) bf16 -> (tile_q, tile_k) f32 on the MXU.
    logits = jnp.dot(q_ref[...], kt_ref[...], preferred_element_type=jnp.float32)

    # Softmax denominator: exp of every (positive and negative) logit.
    # TODO(synk): no log-sum-exp stabilization — matches the PyTorch reference,
    # which also exponentiates raw cosine logits; safe at temperature=0.1.
    exp_ref[...] += _fold_rows(jnp.exp(logits * jnp.float32(inv_temp)))[None]

    # Positive-logit sum: only for key tiles overlapping the positive half of the
    # stacked [positives; negatives] key matrix.
    @pl.when(j * tile_k < num_pos)
    def _pos():
        col = j * tile_k + jax.lax.broadcasted_iota(jnp.int32, logits.shape, 1)
        masked = jnp.where(col < num_pos, logits, jnp.float32(0.0))
        pos_ref[...] += _fold_rows(masked)[None]


def _pick_tile(dim, cap, align):
    for t in (2048, 1024, 512, 256, 128, 64, 32, 16, 8):
        if t <= cap and dim % t == 0 and t % align == 0:
            return t
    return dim  # full-extent block is always legal (bypasses the (8,128) rule)


def _vmem_limit_bytes():
    cap = 64 * 1024 * 1024  # conservative default = v7x physical VMEM
    try:
        cap = int(pltpu.get_tpu_info().vmem_capacity_bytes)
    except Exception:  # older jax / tracing without device info
        pass
    # 96 MiB on v5e/v6e (128 MiB physical), 48 MiB on v7x (64 MiB physical).
    return min(int(cap * 3 // 4), 112 * 1024 * 1024)


def _vmem_estimate(tile_q, tile_k, d):
    inputs = 2 * 2 * d * (tile_q + tile_k)   # bf16 q / key tiles, double-buffered
    temps = 3 * tile_q * tile_k * 4          # f32 logits / exp / masked intermediates
    outs = 2 * 2 * 8 * tile_k * 4            # two (8, tile_k) f32 accumulators
    return inputs + temps + outs


def info_nce_loss(query, positive_keys, negative_keys, temperature=0.1,
                  *, tile_q=None, tile_k=None):
    """InfoNCE loss (unpaired negatives), forward pass as a Pallas TPU kernel."""
    n_q, d = query.shape
    num_pos, d_p = positive_keys.shape
    num_neg, d_n = negative_keys.shape
    assert d == d_p == d_n, "embedding dims must match"
    # The reference concatenates (N, P) and (N, M) logits along dim 0 -> needs P == M.
    assert num_pos == num_neg, (
        "reference torch.cat along dim 0 requires matching column counts (P == M)"
    )
    k_total = num_pos + num_neg
    inv_temp = 1.0 / float(temperature)

    # Normalize once in the wrapper (fused XLA, memory-bound, done exactly once),
    # cast to bf16, stack keys [positives; negatives] and pre-transpose so the
    # kernel does a canonical (M,K)x(K,N) matmul.
    q_n = _l2_normalize_f32(query).astype(jnp.bfloat16)
    keys = jnp.concatenate(
        [_l2_normalize_f32(positive_keys), _l2_normalize_f32(negative_keys)], axis=0)
    keys_t = keys.astype(jnp.bfloat16).T  # (D, P + M)

    vmem_limit = _vmem_limit_bytes()
    if tile_q is None:
        # Keep >= 2 query tiles when possible so the "parallel" axis feeds both
        # v7x TensorCores; cap at 2048 (AI knob: tile_q/2 flop per bf16 key byte).
        cap_q = min(2048, n_q // 2) if n_q >= 16 else n_q
        tile_q = _pick_tile(n_q, max(cap_q, 8), 8)
    if tile_k is None:
        tile_k = _pick_tile(k_total, 512, 128)  # >= 256 fills the 256-wide MXU
    # Shrink tile_q if the f32 logit temporaries would crowd VMEM (v7x has 64 MiB).
    while _vmem_estimate(tile_q, tile_k, d) > vmem_limit * 0.6 and tile_q % 16 == 0:
        tile_q //= 2

    assert n_q % tile_q == 0 and k_total % tile_k == 0, "tiles must divide shapes"
    assert tile_q % 8 == 0 or tile_q == n_q, "tile_q must be 8-aligned or full"
    assert tile_k % 128 == 0 or tile_k == k_total, "tile_k must be 128-aligned or full"
    num_q_tiles = n_q // tile_q
    num_k_tiles = k_total // tile_k

    kernel = functools.partial(_info_nce_partial_kernel, inv_temp=inv_temp,
                               num_pos=num_pos, tile_k=tile_k)

    pos_partials, exp_partials = pl.pallas_call(
        kernel,
        out_shape=(
            jax.ShapeDtypeStruct((num_q_tiles, 8, tile_k), jnp.float32),
            jax.ShapeDtypeStruct((num_q_tiles, 8, tile_k), jnp.float32),
        ),
        grid_spec=pltpu.PrefetchScalarGridSpec(
            num_scalar_prefetch=0,
            grid=(num_q_tiles, num_k_tiles),
            in_specs=[
                pl.BlockSpec((tile_q, d), lambda i, j: (i, 0)),   # bf16 query tile
                pl.BlockSpec((d, tile_k), lambda i, j: (0, j)),   # bf16 stacked-key tile
            ],
            out_specs=[
                pl.BlockSpec((1, 8, tile_k), lambda i, j: (i, 0, 0)),
                pl.BlockSpec((1, 8, tile_k), lambda i, j: (i, 0, 0)),
            ],
        ),
        compiler_params=pltpu.CompilerParams(
            dimension_semantics=("parallel", "arbitrary"),
            vmem_limit_bytes=vmem_limit,
        ),
    )(q_n, keys_t)

    # Tiny scalar epilogue (single cross-lane reduction + log-sum identity):
    #   loss = (N * P * log(S) - sum(pos_logits) / t) / P
    sum_pos = jnp.sum(pos_partials)
    total_exp = jnp.sum(exp_partials)
    loss = (jnp.float32(n_q * num_pos) * jnp.log(total_exp)
            - sum_pos * jnp.float32(inv_temp))
    return loss / jnp.float32(num_pos)


def _reference_info_nce(query, positive_keys, negative_keys, temperature=0.1):
    """Pure-JAX mirror of the PyTorch reference, for correctness checking."""
    def norm(x):
        return x / jnp.maximum(jnp.linalg.norm(x, axis=-1, keepdims=True), _EPS)

    q, p, n = norm(query), norm(positive_keys), norm(negative_keys)
    num_positive = p.shape[0]
    pos_logits = q @ p.T
    neg_logits = q @ n.T
    logits = jnp.concatenate([pos_logits, neg_logits], axis=0)
    pos_exp = jnp.exp(pos_logits / temperature)
    total_exp_sum = jnp.exp(logits / temperature).sum()
    loss_per_pos = -jnp.log(pos_exp / total_exp_sum) / num_positive
    return loss_per_pos.sum()


if __name__ == "__main__":
    key = jax.random.PRNGKey(0)
    k_q, k_p, k_n = jax.random.split(key, 3)

    # Small docstring-like shapes: 64 queries / positives / negatives, embedding 128.
    N, M, D = 64, 64, 128
    query = jax.random.normal(k_q, (N, D), dtype=jnp.float32)
    positive_keys = jax.random.normal(k_p, (N, D), dtype=jnp.float32)
    negative_keys = jax.random.normal(k_n, (M, D), dtype=jnp.float32)

    loss = info_nce_loss(query, positive_keys, negative_keys, temperature=0.1)
    loss = jax.block_until_ready(loss)
    ref = _reference_info_nce(query, positive_keys, negative_keys, temperature=0.1)
    assert jnp.allclose(loss, ref, rtol=1e-2, atol=1e-2), (loss, ref)

    # Second config exercises multiple key tiles (positive/negative halves spanning
    # several reduction steps) and the masked positive-column path.
    M2 = 256
    q2 = jax.random.normal(k_q, (N, D), dtype=jnp.float32)
    pk2 = jax.random.normal(k_p, (M2, D), dtype=jnp.float32)
    nk2 = jax.random.normal(k_n, (M2, D), dtype=jnp.float32)
    loss2 = jax.block_until_ready(
        info_nce_loss(q2, pk2, nk2, temperature=0.1, tile_q=32, tile_k=128))
    ref2 = _reference_info_nce(q2, pk2, nk2, temperature=0.1)
    assert jnp.allclose(loss2, ref2, rtol=1e-2, atol=1e-2), (loss2, ref2)

    print("KERNEL_OK")
</pallas_src>

<mosaic_0001>
module attributes {stable_mosaic.version = 11 : i64} {
  func.func @_info_nce_partial_kernel(%arg0: i32, %arg1: i32, %arg2: memref<32x128xbf16, #tpu.memory_space<vmem>>, %arg3: memref<128x128xbf16, #tpu.memory_space<vmem>>, %arg4: memref<1x8x128xf32, #tpu.memory_space<vmem>>, %arg5: memref<1x8x128xf32, #tpu.memory_space<vmem>>) attributes {dimension_semantics = [#tpu.dimension_semantics<parallel>, #tpu.dimension_semantics<arbitrary>], iteration_bounds = array<i64: 2, 1>, scalar_prefetch = 0 : i64, scratch_operands = 0 : i64, tpu.core_type = #tpu.core_type<tc>, window_params = [{transform_indices = @transform_0, window_bounds = array<i64: 32, 128>}, {transform_indices = @transform_1, window_bounds = array<i64: 128, 128>}, {transform_indices = @transform_2, window_bounds = array<i64: 1, 8, 128>}, {transform_indices = @transform_3, window_bounds = array<i64: 1, 8, 128>}]} {
    %c0_i32 = arith.constant 0 : i32
    %0 = arith.cmpi eq, %arg1, %c0_i32 : i32
    %1 = arith.extui %0 : i1 to i32
    %c0_i32_0 = arith.constant 0 : i32
    %2 = arith.cmpi ne, %1, %c0_i32_0 : i32
    scf.if %2 {
      %cst_13 = arith.constant 0.000000e+00 : f32
      %19 = vector.broadcast %cst_13 : f32 to vector<1x8x128xf32>
      %c0_14 = arith.constant 0 : index
      %c0_15 = arith.constant 0 : index
      %c0_16 = arith.constant 0 : index
      %20 = vector.load %arg4[%c0_14, %c0_15, %c0_16] : memref<1x8x128xf32, #tpu.memory_space<vmem>>, vector<1x8x128xf32>
      tpu.vector_store %arg4[%c0_14, %c0_15, %c0_16], %19 {strides = array<i32>} : memref<1x8x128xf32, #tpu.memory_space<vmem>>, vector<1x8x128xf32>,
      %cst_17 = arith.constant 0.000000e+00 : f32
      %21 = vector.broadcast %cst_17 : f32 to vector<1x8x128xf32>
      %c0_18 = arith.constant 0 : index
      %c0_19 = arith.constant 0 : index
      %c0_20 = arith.constant 0 : index
      %22 = vector.load %arg5[%c0_18, %c0_19, %c0_20] : memref<1x8x128xf32, #tpu.memory_space<vmem>>, vector<1x8x128xf32>
      tpu.vector_store %arg5[%c0_18, %c0_19, %c0_20], %21 {strides = array<i32>} : memref<1x8x128xf32, #tpu.memory_space<vmem>>, vector<1x8x128xf32>,
    } else {
    }
    %c0 = arith.constant 0 : index
    %c0_1 = arith.constant 0 : index
    %3 = vector.load %arg2[%c0, %c0_1] : memref<32x128xbf16, #tpu.memory_space<vmem>>, vector<32x128xbf16>
    %c0_2 = arith.constant 0 : index
    %c0_3 = arith.constant 0 : index
    %4 = vector.load %arg3[%c0_2, %c0_3] : memref<128x128xbf16, #tpu.memory_space<vmem>>, vector<128x128xbf16>
    %cst = arith.constant dense<0.000000e+00> : vector<32x128xf32>
    %5 = tpu.matmul %3, %4, %cst {dimension_numbers = #tpu.dot_dimension_numbers<[1], [0], [0], [1], [0, 0, 1, 1], [], []>} : vector<32x128xbf16>, vector<128x128xbf16>, vector<32x128xf32> -> vector<32x128xf32>
    %c0_4 = arith.constant 0 : index
    %c0_5 = arith.constant 0 : index
    %c0_6 = arith.constant 0 : index
    %6 = vector.load %arg5[%c0_4, %c0_5, %c0_6] : memref<1x8x128xf32, #tpu.memory_space<vmem>>, vector<1x8x128xf32>
    %cst_7 = arith.constant 1.000000e+01 : f32
    %7 = vector.broadcast %cst_7 : f32 to vector<32x128xf32>
    %8 = arith.mulf %5, %7 : vector<32x128xf32>
    %9 = math.exp %8 : vector<32x128xf32>
    %10 = vector.shape_cast %9 : vector<32x128xf32> to vector<4x8x128xf32>
    %cst_8 = arith.constant dense<0.000000e+00> : vector<8x128xf32>
    %11 = vector.multi_reduction <add>, %10, %cst_8 [0] : vector<4x8x128xf32> to vector<8x128xf32>
    %12 = vector.shape_cast %11 : vector<8x128xf32> to vector<1x8x128xf32>
    %13 = arith.addf %6, %12 : vector<1x8x128xf32>
    %c0_9 = arith.constant 0 : index
    %c0_10 = arith.constant 0 : index
    %c0_11 = arith.constant 0 : index
    %14 = vector.load %arg5[%c0_9, %c0_10, %c0_11] : memref<1x8x128xf32, #tpu.memory_space<vmem>>, vector<1x8x128xf32>
    tpu.vector_store %arg5[%c0_9, %c0_10, %c0_11], %13 {strides = array<i32>} : memref<1x8x128xf32, #tpu.memory_space<vmem>>, vector<1x8x128xf32>,
    %c128_i32 = arith.constant 128 : i32
    %15 = arith.muli %arg1, %c128_i32 : i32
    %c64_i32 = arith.constant 64 : i32
    %16 = arith.cmpi slt, %15, %c64_i32 : i32
    %17 = arith.extui %16 : i1 to i32
    %c0_i32_12 = arith.constant 0 : i32
    %18 = arith.cmpi ne, %17, %c0_i32_12 : i32
    scf.if %18 {
      %c128_i32_13 = arith.constant 128 : i32
      %19 = arith.muli %arg1, %c128_i32_13 : i32
      %20 = tpu.iota {dimensions = array<i32: 1>} : vector<32x128xi32>
      %21 = vector.broadcast %19 : i32 to vector<32x128xi32>
      %22 = arith.addi %21, %20 : vector<32x128xi32>
      %c64_i32_14 = arith.constant 64 : i32
      %23 = vector.broadcast %c64_i32_14 : i32 to vector<32x128xi32>
      %24 = arith.cmpi slt, %22, %23 : vector<32x128xi32>
      %cst_15 = arith.constant 0.000000e+00 : f32
      %25 = vector.broadcast %cst_15 : f32 to vector<32x128xf32>
      %26 = arith.select %24, %5, %25 : vector<32x128xi1>, vector<32x128xf32>
      %c0_16 = arith.constant 0 : index
      %c0_17 = arith.constant 0 : index
      %c0_18 = arith.constant 0 : index
      %27 = vector.load %arg4[%c0_16, %c0_17, %c0_18] : memref<1x8x128xf32, #tpu.memory_space<vmem>>, vector<1x8x128xf32>
      %28 = vector.shape_cast %26 : vector<32x128xf32> to vector<4x8x128xf32>
      %cst_19 = arith.constant dense<0.000000e+00> : vector<8x128xf32>
      %29 = vector.multi_reduction <add>, %28, %cst_19 [0] : vector<4x8x128xf32> to vector<8x128xf32>
      %30 = vector.shape_cast %29 : vector<8x128xf32> to vector<1x8x128xf32>
      %31 = arith.addf %27, %30 : vector<1x8x128xf32>
      %c0_20 = arith.constant 0 : index
      %c0_21 = arith.constant 0 : index
      %c0_22 = arith.constant 0 : index
      %32 = vector.load %arg4[%c0_20, %c0_21, %c0_22] : memref<1x8x128xf32, #tpu.memory_space<vmem>>, vector<1x8x128xf32>
      tpu.vector_store %arg4[%c0_20, %c0_21, %c0_22], %31 {strides = array<i32>} : memref<1x8x128xf32, #tpu.memory_space<vmem>>, vector<1x8x128xf32>,
    } else {
    }
    return
  }
  func.func @transform_0(%arg0: i32, %arg1: i32) -> (i32, i32) {
    %c0_i32 = arith.constant 0 : i32
    %c0_i32_0 = arith.constant 0 : i32
    return %arg0, %c0_i32 : i32, i32
  }
  func.func @transform_1(%arg0: i32, %arg1: i32) -> (i32, i32) {
    %c0_i32 = arith.constant 0 : i32
    %c0_i32_0 = arith.constant 0 : i32
    return %c0_i32, %arg1 : i32, i32
  }
  func.func @transform_2(%arg0: i32, %arg1: i32) -> (i32, i32, i32) {
    %c0_i32 = arith.constant 0 : i32
    %c0_i32_0 = arith.constant 0 : i32
    %c0_i32_1 = arith.constant 0 : i32
    return %arg0, %c0_i32, %c0_i32_0 : i32, i32, i32
  }
  func.func @transform_3(%arg0: i32, %arg1: i32) -> (i32, i32, i32) {
    %c0_i32 = arith.constant 0 : i32
    %c0_i32_0 = arith.constant 0 : i32
    %c0_i32_1 = arith.constant 0 : i32
    return %arg0, %c0_i32, %c0_i32_0 : i32, i32, i32
  }
}

</mosaic_0001>

<bundles_post_ra>
// kernel: tpu_custom_call.1
= control target key start
LH: loop header
LB: loop body
LE: loop exit
PB: predicated region body
PF: predicated region fallthrough
CT: control target
= control target key end

     0   :  { %9 = vsyncpa [#allocation3], 0  ;;  %s1122_s0 = inlined_call_operand.hbm [shape: bf16[64,128], index: 0, kind: input, shape index: {}]   ;;  %s1123_s1 = inlined_call_operand.hbm [shape: bf16[128,128], index: 1, kind: input, shape index: {}]   ;;  %s1124_s2 = inlined_call_operand.hbm [shape: f32[2,8,128], index: 2, kind: output, shape index: {0}]   ;;  %s1125_s3 = inlined_call_operand.hbm [shape: f32[2,8,128], index: 3, kind: output, shape index: {1}]  }
   0x1   :  { %11 = vsyncpa [#allocation3 + $0x1], 0 }
   0x2   :  { %12 = vsyncpa [#allocation6], 0 }
   0x3   :  { %13 = vsyncpa [#allocation4], 0 }
   0x4   :  { %15 = vsyncpa [#allocation4 + $0x1], 0 }
   0x5   :  { %16 = vsyncpa [#allocation9], 0 }
   0x6   :  { %18 = vsyncpa [#allocation9 + $0x1], 0  ;;  %s918_s12 = smov 0   ;;  %s920_s13 = smov 0  }
   0x7   :  { %s922_s14 = smov 0   ;;  %s924_s15 = smov 0  }
   0x8   :  { %s926_s16 = smov 0   ;;  %s928_s17 = smov 0  }
   0x9 LB: > { %s563_s18 = sadd.s32 4294967295, %s890_s17   ;;  %s564_s19 = sadd.s32 4294967294, %s890_s17   ;;  %s890_s17 = sphi %s928_s17, %s24_s17   ;;  %s886_s16 = sphi %s926_s16, %s1147_s16   ;;  %s882_s15 = sphi %s924_s15, %s1146_s15   ;;  %s878_s14 = sphi %s922_s14, %s1145_s14   ;;  %s874_s13 = sphi %s920_s13, %s1144_s13   ;;  %s870_s12 = sphi %s918_s12, %s1143_s12  }
   0xa   : > { %p56_p0 = scmp.ne.s32.totalorder %s874_s13, %s870_s12  ;;  %p952_p1 = scmp.eq.s32.totalorder %s563_s18, 0 }
   0xb   : > { %p956_p2 = scmp.eq.s32.totalorder %s563_s18, 1  ;;  %p112_p3 = scmp.eq.s32.totalorder %s564_s19, 1 }
   0xc   : > { %p962_p4 = por %p952_p1, %p56_p0  ;;  %p565_p5 = scmp.ge.s32.totalorder %s890_s17, 1 }
   0xd   : > { %p967_p6 = por %p112_p3, %p56_p0  ;;  %p145_p7 = scmp.lt.s32.totalorder %s890_s17, 3 }
   0xe   : > { %s1131_s22 = scalar_select %p962_p4, 1, 0 }
   0xf   : > { %s1132_s23 = scalar_select %p967_p6, 1, 0 }
  0x10   : > { %p972_p8 = pnand %p565_p5, %p145_p7  ;;  %s892_s25 = smov [#allocation5]  }
  0x11   : > { %s159_s26 = sshll.u32 %s892_s25, 4  ;;  %s36_s28 = sadd.s32 1, %s886_s16  ;;  %s160_s26 = int_to_ptr.vmem [resolvable:$true] %s159_s26 }
  0x12   : > { %p633_p9 = pneg %p972_p8  ;;  %s733_s29 = scalar_lea.vmem %s160_s26, 1024 }
  0x13   : > { %p734_p13 = scmp.ne.s32.totalorder %s160_s26, %s733_s29  ;;  %p741_p5 = scmp.lt.s32.totalorder %s160_s26, %s160_s26 }
  0x14   : > { %p981_p11 = pnand %p633_p9, %p952_p1  ;;  %p742_p7 = scmp.lt.s32.totalorder %s733_s29, %s733_s29 }
  0x16   : > { %p724_p12 = pneg %p981_p11  ;;  %p743_p6 = por %p742_p7, %p741_p5 }
  0x18   : > { %p736_p0 = pnand %p734_p13, %p724_p12 }
  0x1a   : > { %p737_p3 = pneg %p736_p0 }
  0x1c   : > { %p744_p4 = pnand %p743_p6, %p737_p3 }
  0x1e   : > { %747 = shalt.err (!%p744_p4)
}
  0x1f   : > { %s1127_s30 = smov 64   ;;  %s1128_s4 = smov 4  }
  0x20   : > { %636 = dma.hbm_to_vmem [thread:$0]  (!%p981_p11), %s1123_s1, 1024, %s160_s26, [#allocation6], %s1127_s30, %s1127_s30, %s1128_s4  }
  0x21   : > { %p38_p4 = scmp.ge.s32.totalorder %s36_s28, 2  ;;  %s43_s7 = sadd.s32 1, %s878_s14 }
  0x22   : > { %p50_p6 = scmp.ne.s32.totalorder %s878_s14, %s874_s13  ;;  %p51_p9 = scmp.eq.s32.totalorder %s890_s17, 0 }
  0x23   : > { %s1149_s28 = smov (%p38_p4, %s36_s28), 0  ;;  %p649_p0 = scmp.lt.s32.totalorder %s890_s17, 2 }
  0x24   : > { %p1002_p12 = por %p51_p9, %p50_p6  ;;  %p1008_p13 = por %p956_p2, %p50_p6 }
  0x25   : > { %s40_s10 = ssub.s32 %s886_s16, %s1149_s28  ;;  %s173_s11 = sand.u32 1, %s878_s14  }
  0x26   : > { %p41_p11 = scmp.eq.s32.totalorder %s40_s10, 0  ;;  %s568_s18 = sshll.u32 %s173_s11, 4 }
  0x27   : > { %s592_s25 = sshll.u32 %s886_s16, 8  ;;  %s177_s5 = scalar_lea.vmem [#allocation2], %s568_s18 }
  0x28   : > { %s1017_s19 = scalar_select %p41_p11, %s878_s14, %s43_s7  }
  0x29   : > { %s183_s29 = scalar_lea.hbm %s1122_s0, %s592_s25  ;;  %s184_s6 = sshll.u32 %s177_s5, 4  ;;  %s185_s6 = int_to_ptr.vmem [resolvable:$true] %s184_s6 }
  0x2a   : > { %p1025_p2 = pnand %p649_p0, %p1002_p12  ;;  %s174_s30 = scalar_lea.sflag [#allocation3], %s173_s11 }
  0x2b   : > { %s761_s10 = scalar_lea.vmem %s185_s6, 256  ;;  %s895_s7 = smov [#allocation2]  }
  0x2c   : > { %p750_p3 = pneg %p1025_p2  ;;  %p762_p5 = scmp.ne.s32.totalorder %s185_s6, %s761_s10 }
  0x2d   : > { %s766_s4 = sshll.u32 %s895_s7, 4  ;;  %s767_s4 = int_to_ptr.vmem [resolvable:$false] %s766_s4 }
  0x2e   : > { %p764_p7 = pnand %p762_p5, %p750_p3  ;;  %s768_s25 = scalar_lea.vmem %s767_s4, 512 }
  0x2f   : > { %p769_p6 = scmp.lt.s32.totalorder %s185_s6, %s767_s4  ;;  %p770_p9 = scmp.lt.s32.totalorder %s768_s25, %s761_s10 }
  0x30   : > { %p765_p4 = pneg %p764_p7 }
  0x31   : > { %p771_p11 = por %p770_p9, %p769_p6 }
  0x33   : > { %p772_p10 = pnand %p771_p11, %p765_p4 }
  0x35   : > { %775 = shalt.err (!%p772_p10)
}
  0x36   : > { %s1138_s8 = smov 4   ;;  %s1139_s18 = smov 64  }
  0x37   : > { %640 = dma.hbm_to_vmem [thread:$0]  (!%p1025_p2), %s183_s29, 256, %s185_s6, %s174_s30, %s1139_s18, %s1139_s18, %s1138_s8  }
  0x38   : > { %196 = sbr.rel (%p972_p8) target bundleno = 339 (0x153), region = 28  ;;  %s1039_s11 = sand.u32 (!%p972_p8), 1, %s874_s13  }
  0x39   : > { %s572_s4 = sshll.u32 (!%p972_p8), %s1039_s11, 4  ;;  %s199_s26 = scalar_lea.sflag (!%p972_p8), [#allocation3], %s1039_s11 }
  0x3a   : > { %s202_s27 = scalar_lea.vmem (!%p972_p8), [#allocation2], %s572_s4  ;;  %p1140_p12 = scmp.ne.s32.totalorder (!%p972_p8), %s1131_s22, 0 }
  0x3d   : > { %853 = dma.done.wait (%p1140_p12), %s199_s26, 256  }
  0x3e   : > { %855 = vsyncadd (%p1140_p12), %s199_s26, 4294967040 }
  0x3f   : > { %857 = dma.done.wait (%p952_p1), [#allocation6], 1024  }
  0x40   : > { %859 = vsyncadd (%p952_p1), [#allocation6], 4294966272  ;;  %v704_v0 = vld [vmem:[#allocation5 + $0x38] sm:$0xff]   ;;  %v705_v1 = vld [vmem:[#allocation5 + $0x30] sm:$0xff]   ;;  %v394_v10 = vlaneseq  ;;  %s574_s20 = sshll.u32 %s1039_s11, 3  ;;  %s588_s22 = sshll.u32 %s882_s15, 7 }
  0x41   : > { %603 = vmatprep.subr.bf16.mxu0 %v704_v0  ;;  %v706_v2 = vld [vmem:[#allocation5 + $0x28] sm:$0xff]   ;;  %v707_v3 = vld [vmem:[#allocation5 + $0x20] sm:$0xff]   ;;  %v708_v5 = vld [vmem:[#allocation5 + $0x18] sm:$0xff]   ;;  %s226_s24 = scalar_lea.vmem [#allocation7], %s574_s20  ;;  %s1060_s6 = scalar_lea.hbm %s1124_s2, %s588_s22 }
  0x42   : > { %604 = vmatpush3.bf16.msra.mxu0 %v704_v0  ;;  %v712_v4 = vld [vmem:[%s202_s27] sm:$0xff]   ;;  %v710_v7 = vld [vmem:[#allocation5 + $0x8] sm:$0xff]   ;;  %v395_v12 = vand.u32 127, %v394_v10  ;;  %s428_s30 = sshll.u32 %s226_s24, 4  ;;  %s410_s21 = scalar_lea.sflag [#allocation4], %s1039_s11  ;;  %s429_s30 = int_to_ptr.vmem [resolvable:$true] %s428_s30 }
  0x43   : > { %605 = vmatprep.subr.bf16.mxu0 %v705_v1  ;;  %619 = vmatprep.mubr.bf16.mxu0 %v712_v4  ;;  %v709_v6 = vld [vmem:[#allocation5 + $0x10] sm:$0xff]   ;;  %v711_v8 = vld [vmem:[#allocation5] sm:$0xff]   ;;  %v713_v9 = vld [vmem:[%s202_s27 + $0x8] sm:$0xff]   ;;  %s776_s10 = scalar_lea.vmem %s429_s30, 128  ;;  %s896_s7 = smov [#allocation7]  }
  0x44   : > { %vm398_vm0 = vcmp.lt.s32.totalorder %v395_v12, 64  ;;  %p777_p1 = scmp.ne.s32.totalorder %s429_s30, %s776_s10  ;;  %s780_s25 = sshll.u32 %s896_s7, 4  ;;  %s781_s25 = int_to_ptr.vmem [resolvable:$false] %s780_s25 }
  0x45   : > { %s782_s8 = scalar_lea.vmem %s781_s25, 256  ;;  %p783_p0 = scmp.lt.s32.totalorder %s429_s30, %s781_s25 }
  0x46   : > { %606 = vmatpush3.bf16.msra.mxu0 %v705_v1  ;;  %p778_p8 = pnand %p777_p1, %p1008_p13  ;;  %p784_p2 = scmp.lt.s32.totalorder %s782_s8, %s776_s10 }
  0x47   : > { %607 = vmatprep.subr.bf16.mxu0 %v706_v2 }
  0x48   : > { %p779_p10 = pneg %p778_p8  ;;  %p785_p3 = por %p784_p2, %p783_p0 }
  0x4a   : > { %608 = vmatpush3.bf16.msra.mxu0 %v706_v2  ;;  %p786_p5 = pnand %p785_p3, %p779_p10 }
  0x4b   : > { %609 = vmatprep.subr.bf16.mxu0 %v707_v3 }
  0x4e   : > { %610 = vmatpush3.bf16.msra.mxu0 %v707_v3 }
  0x4f   : > { %611 = vmatprep.subr.bf16.mxu0 %v708_v5 }
  0x52   : > { %612 = vmatpush3.bf16.msra.mxu0 %v708_v5 }
  0x53   : > { %613 = vmatprep.subr.bf16.mxu0 %v709_v6 }
  0x56   : > { %614 = vmatpush3.bf16.msra.mxu0 %v709_v6 }
  0x57   : > { %615 = vmatprep.subr.bf16.mxu0 %v710_v7 }
  0x5a   : > { %616 = vmatpush3.bf16.msra.mxu0 %v710_v7 }
  0x5b   : > { %617 = vmatprep.subr.bf16.mxu0 %v711_v8 }
  0x5e   : > { %618 = vmatpush3.bf16.msra.mxu0 %v711_v8 }
  0x61   : > { %620 = vmatmul.mubr.bf16.vlgmr.msra.gmra.mxu0 %v713_v9 }
 0x121   : > { %v621_v11 = vpop.f32.mrf.mxu0 }
 0x122   : > { %v374_v16 = vmul.f32 10.0, %v621_v11  ;;  %v401_v25 = vsel %vm398_vm0, %v621_v11, 0.0 }
 0x123   : > { %v356_v13 = vpop.f32.mrf.mxu0 }
 0x124   : > { %v372_v14 = vmul.f32 10.0, %v356_v13  ;;  %v399_v19 = vsel %vm398_vm0, %v356_v13, 0.0  ;;  %v380_v24 = vmul.f32 1.442695, %v374_v16 }
 0x125   : > { %v622_v15 = vpop.f32.mrf.mxu0 }
 0x126   : > { %v376_v17 = vmul.f32 1.442695, %v372_v14  ;;  %v375_v20 = vmul.f32 10.0, %v622_v15  ;;  %v402_v29 = vsel %vm398_vm0, %v622_v15, 0.0 }
 0x127   : > { %v359_v18 = vpop.f32.mrf.mxu0 }
 0x128   : > { %v373_v21 = vmul.f32 10.0, %v359_v18  ;;  %v400_v22 = vsel %vm398_vm0, %v359_v18, 0.0  ;;  %714 = vpow2.f32 %v376_v17  ;;  %v382_v28 = vmul.f32 1.442695, %v375_v20 }
 0x129   : > { %v404_v23 = vadd.f32 %v400_v22, %v399_v19 }
 0x12a   : > { %v378_v26 = vmul.f32 1.442695, %v373_v21 }
 0x12b   : > { %v405_v27 = vadd.f32 %v404_v23, %v401_v25 }
 0x12c   : > { %716 = vpow2.f32 %v378_v26 }
 0x12d   : > { %v406_v30 = vadd.f32 %v405_v27, %v402_v29  ;;  %718 = vpow2.f32 %v380_v24 }
 0x12e   : > { %720 = vpow2.f32 %v382_v28 }
 0x12f   : > { %408 = vst [vmem:[%s226_s24] sm:$0xff] %v406_v30 }
 0x130   : > { %789 = shalt.err (!%p786_p5)
}
 0x131   : > { %s790_s18 = scalar_lea.hbm %s1060_s6, 128  ;;  %s794_s27 = scalar_lea.hbm %s1124_s2, 256 }
 0x132   : > { %p791_p7 = scmp.ne.s32.totalorder %s1060_s6, %s790_s18  ;;  %p795_p9 = scmp.lt.s32.totalorder %s1060_s6, %s1124_s2 }
 0x133   : > { %p796_p11 = scmp.lt.s32.totalorder %s794_s27, %s790_s18 }
 0x134   : > { %p792_p4 = pnand %p791_p7, %p1008_p13 }
 0x135   : > { %p797_p12 = por %p796_p11, %p795_p9 }
 0x136   : > { %p793_p6 = pneg %p792_p4 }
 0x138   : > { %p798_p1 = pnand %p797_p12, %p793_p6 }
 0x13a   : > { %801 = shalt.err (!%p798_p1)
}
 0x13b   : > { %629 = dma.vmem_to_hbm [thread:$0]  (%p1008_p13), %s429_s30, 128, %s1060_s6, %s410_s21   ;;  %v715_v31 = vpop.eup %714 }
 0x13c   : > { %v717_v32 = vpop.eup %716  ;;  %s233_s5 = scalar_lea.vmem [#allocation8], %s574_s20  ;;  %s439_s8 = scalar_lea.hbm %s1125_s3, %s588_s22 }
 0x13d   : > { %v384_v33 = vadd.f32 %v717_v32, %v715_v31  ;;  %v719_v34 = vpop.eup %718  ;;  %s441_s10 = sshll.u32 %s233_s5, 4  ;;  %s415_s18 = scalar_lea.sflag [#allocation9], %s1039_s11  ;;  %s442_s10 = int_to_ptr.vmem [resolvable:$true] %s441_s10 }
 0x13e   : > { %v721_v36 = vpop.eup %720  ;;  %s802_s30 = scalar_lea.vmem %s442_s10, 128  ;;  %s897_s6 = smov [#allocation8]  }
 0x13f   : > { %v385_v35 = vadd.f32 %v719_v34, %v384_v33  ;;  %p803_p8 = scmp.ne.s32.totalorder %s442_s10, %s802_s30  ;;  %s806_s21 = sshll.u32 %s897_s6, 4  ;;  %s807_s21 = int_to_ptr.vmem [resolvable:$false] %s806_s21 }
 0x140   : > { %s808_s4 = scalar_lea.vmem %s807_s21, 256  ;;  %p809_p2 = scmp.lt.s32.totalorder %s442_s10, %s807_s21 }
 0x141   : > { %v386_v37 = vadd.f32 %v721_v36, %v385_v35  ;;  %p804_p10 = pnand %p803_p8, %p1008_p13  ;;  %p810_p3 = scmp.lt.s32.totalorder %s808_s4, %s802_s30 }
 0x143   : > { %388 = vst [vmem:[%s233_s5] sm:$0xff] %v386_v37  ;;  %p805_p0 = pneg %p804_p10  ;;  %p811_p5 = por %p810_p3, %p809_p2 }
 0x145   : > { %p812_p7 = pnand %p811_p5, %p805_p0 }
 0x147   : > { %815 = shalt.err (!%p812_p7)
}
 0x148   : > { %s816_s15 = scalar_lea.hbm %s439_s8, 128  ;;  %s820_s22 = scalar_lea.hbm %s1125_s3, 256 }
 0x149   : > { %p817_p4 = scmp.ne.s32.totalorder %s439_s8, %s816_s15  ;;  %p821_p11 = scmp.lt.s32.totalorder %s439_s8, %s1125_s3 }
 0x14a   : > { %p822_p12 = scmp.lt.s32.totalorder %s820_s22, %s816_s15 }
 0x14b   : > { %p818_p6 = pnand %p817_p4, %p1008_p13 }
 0x14c   : > { %p823_p1 = por %p822_p12, %p821_p11 }
 0x14d   : > { %p819_p9 = pneg %p818_p6 }
 0x14f   : > { %p824_p8 = pnand %p823_p1, %p819_p9 }
 0x151   : > { %827 = shalt.err (!%p824_p8)
}
 0x152   : > { %630 = dma.vmem_to_hbm [thread:$0]  (%p1008_p13), %s442_s10, 128, %s439_s8, %s415_s18  }
 0x153 PF: > { %s453_s24 = sand.u32 1, %s870_s12   ;;  %p1141_p10 = scmp.ne.s32.totalorder %s1132_s23, 0 }
 0x154   : > { %p1142_p0 = scmp.ge.s32.totalorder %s890_s17, 2  ;;  %s454_s29 = scalar_lea.sflag [#allocation4], %s453_s24 }
 0x156   : > { %p642_p2 = pnand %p1142_p0, %p1141_p10 }
 0x158   : > { %p643_p3 = pneg %p642_p2 }
 0x15a   : > { %861 = dma.done.wait (%p643_p3), %s454_s29, 128  }
 0x15b   : > { %863 = vsyncadd (%p643_p3), %s454_s29, 4294967168  ;;  %s463_s5 = scalar_lea.sflag [#allocation9], %s453_s24 }
 0x15c   : > { %865 = dma.done.wait (%p643_p3), %s463_s5, 128  }
 0x15d   : > { %867 = vsyncadd (%p643_p3), %s463_s5, 4294967168  ;;  %s24_s17 = sadd.s32 1, %s890_s17   ;;  %s1143_s12 = smov %s874_s13 }
 0x15e   : > { %p21_p5 = scmp.ge.s32.totalorder %s24_s17, 4   ;;  %s1144_s13 = smov %s878_s14 }
 0x15f   : > { %s1145_s14 = smov %s1017_s19  ;;  %s1146_s15 = smov %s886_s16 }
 0x160   : > { %s1147_s16 = smov %s1149_s28  ;;  %23 = sbr.rel (!%p21_p5) target bundleno = 9 (0x9), region = 103 }
 0x165   :  { %468 = vsyncpa [#allocation3], 1 }
 0x166   :  { %470 = vsyncpa [#allocation3 + $0x1], 1 }
 0x167   :  { %471 = vsyncpa [#allocation6], 1 }
 0x168   :  { %472 = vsyncpa [#allocation4], 1 }
 0x169   :  { %474 = vsyncpa [#allocation4 + $0x1], 1 }
 0x16a   :  { %475 = vsyncpa [#allocation9], 1 }
 0x16b   :  { %477 = vsyncpa [#allocation9 + $0x1], 1 }

</bundles_post_ra>
